<compile_context>
chip_gen: v7x
topology: tpu7x:2x2x1
jax: 0.10.0
libtpu: 0.0.40
codegen_flags: <defaults>
</compile_context>

<pallas_src>
import math

import jax
import jax.numpy as jnp
from jax.experimental import pallas as pl
from jax.experimental.pallas import tpu as pltpu

# GELU constants hoisted to Python so they are not re-materialized per grid step.
_GELU_C = math.sqrt(2.0 / math.pi)
_GELU_CUBE_COEFF = 0.44715  # NOTE: mirrors the reference module exactly (it uses 0.44715, not 0.044715).


def _gelu_tanh(x):
    # 0.5 * x * (1 + tanh(sqrt(2/pi) * (x + 0.44715 * x^3)))
    return 0.5 * x * (1.0 + jnp.tanh(_GELU_C * (x + _GELU_CUBE_COEFF * (x * x * x))))


def _ff_kernel(x_ref, w1_ref, b1_ref, w2_ref, b2_ref, o_ref, acc_ref):
    """One (tm, E) row tile of the output, streamed over H in th-sized chunks.

    x_ref  : (tm, E)   compute dtype (bf16 by default)
    w1_ref : (E, th)   compute dtype
    b1_ref : (1, th)   f32
    w2_ref : (th, E)   compute dtype
    b2_ref : (1, E)    f32
    o_ref  : (tm, E)   output dtype
    acc_ref: (tm, E)   f32 scratch accumulator (resident across the H axis)
    """
    h_idx = pl.program_id(1)

    @pl.when(h_idx == 0)
    def _init():
        # Fuse the output bias into the accumulator init (saves a full-tile VPU pass).
        acc_ref[...] = jnp.broadcast_to(b2_ref[...], acc_ref.shape).astype(jnp.float32)

    # First matmul chunk on the MXU, f32 accumulation.
    h = jnp.dot(x_ref[...], w1_ref[...], preferred_element_type=jnp.float32)
    # Bias + GELU in f32 (EUP tanh hides under the MXU slot).
    h = _gelu_tanh(h + b1_ref[...])
    # Second matmul chunk, accumulated into the resident f32 tile.
    acc_ref[...] += jnp.dot(h.astype(w2_ref.dtype), w2_ref[...],
                            preferred_element_type=jnp.float32)

    @pl.when(h_idx == pl.num_programs(1) - 1)
    def _finalize():
        o_ref[...] = acc_ref[...].astype(o_ref.dtype)


def _round_up(x, m):
    return (x + m - 1) // m * m


def _pick_th(H):
    for cand in (512, 256, 128):
        if H % cand == 0:
            return cand
    return H  # fall back to full extent if H is not a multiple of 128


def feedforward(x, w1, b1, w2, b2, *, tm=256, th=None, compute_dtype=jnp.bfloat16):
    """y = GELU(x @ w1 + b1) @ w2 + b2, with x of shape (..., E)."""
    orig_shape = x.shape
    E = x.shape[-1]
    H = w1.shape[1]
    assert w1.shape == (E, H) and w2.shape == (H, E)
    assert b1.shape[-1] == H and b2.shape[-1] == E

    M = 1
    for d in orig_shape[:-1]:
        M *= d
    out_dtype = x.dtype

    # ---- tile sizes --------------------------------------------------------
    if th is None:
        th = _pick_th(H)
    assert H % th == 0, "hidden dim must be divisible by th"
    tm = max(8, min(tm, _round_up(M, 8)))
    tm = _round_up(tm, 8)
    M_pad = _round_up(M, tm)

    x2d = x.reshape(M, E)
    if M_pad != M:
        x2d = jnp.pad(x2d, ((0, M_pad - M), (0, 0)))

    # bf16 MXU inputs (f32 accumulation inside the kernel); biases stay f32.
    x2d = x2d.astype(compute_dtype)
    w1c = w1.astype(compute_dtype)
    w2c = w2.astype(compute_dtype)
    b1_2d = b1.reshape(1, H).astype(jnp.float32)
    b2_2d = b2.reshape(1, E).astype(jnp.float32)

    grid = (M_pad // tm, H // th)

    # ---- VMEM budget (double-buffered tiles + f32 accumulator + headroom) ---
    in_bytes = jnp.dtype(compute_dtype).itemsize
    out_bytes = jnp.dtype(out_dtype).itemsize
    tile_bytes = (tm * E * in_bytes      # x tile
                  + E * th * in_bytes    # W1 column tile
                  + th * 4               # b1 tile
                  + th * E * in_bytes    # W2 row tile
                  + E * 4                # b2
                  + tm * E * out_bytes)  # out tile
    vmem_limit = int(min(max(32 << 20, 2 * tile_bytes + tm * E * 4 + (8 << 20)),
                         64 << 20))      # cap at v7x-safe 64 MiB

    cost = pl.CostEstimate(
        flops=4 * M_pad * E * H,               # two matmuls
        transcendentals=M_pad * H,             # tanh in GELU
        bytes_accessed=(x2d.size * in_bytes + w1c.size * in_bytes
                        + w2c.size * in_bytes + b1_2d.size * 4 + b2_2d.size * 4
                        + M_pad * E * out_bytes),
    )

    out = pl.pallas_call(
        _ff_kernel,
        out_shape=jax.ShapeDtypeStruct((M_pad, E), out_dtype),
        grid_spec=pltpu.PrefetchScalarGridSpec(
            num_scalar_prefetch=0,
            grid=grid,
            in_specs=[
                pl.BlockSpec((tm, E), lambda i, h: (i, 0)),  # x row tile
                pl.BlockSpec((E, th), lambda i, h: (0, h)),  # W1 column tile (streamed)
                pl.BlockSpec((1, th), lambda i, h: (0, h)),  # b1 tile
                pl.BlockSpec((th, E), lambda i, h: (h, 0)),  # W2 row tile (streamed)
                pl.BlockSpec((1, E), lambda i, h: (0, 0)),   # b2 (resident)
            ],
            out_specs=pl.BlockSpec((tm, E), lambda i, h: (i, 0)),
            scratch_shapes=[pltpu.VMEM((tm, E), jnp.float32)],
        ),
        compiler_params=pltpu.CompilerParams(
            dimension_semantics=("parallel", "arbitrary"),
            vmem_limit_bytes=vmem_limit,
        ),
        cost_estimate=cost,
    )(x2d, w1c, b1_2d, w2c, b2_2d)

    if M_pad != M:
        out = out[:M]
    return out.reshape(orig_shape)


def feedforward_ref(x, w1, b1, w2, b2):
    h = x @ w1 + b1
    h = _gelu_tanh(h)
    return h @ w2 + b2


if __name__ == "__main__":
    # Small but lane-dense shapes (E multiple of 128 so loads/stores are unmasked).
    cfg = {"embedding_dim": 128}
    E = cfg["embedding_dim"]
    H = 4 * E          # 512
    B, S = 2, 64       # M = 128 tokens

    key = jax.random.PRNGKey(0)
    kx, kw1, kb1, kw2, kb2 = jax.random.split(key, 5)

    x = jax.random.normal(kx, (B, S, E), dtype=jnp.float32)
    # Deterministic fan-in-scaled parameter init.
    w1 = jax.random.normal(kw1, (E, H), dtype=jnp.float32) * (1.0 / math.sqrt(E))
    b1 = jax.random.normal(kb1, (H,), dtype=jnp.float32) * 0.01
    w2 = jax.random.normal(kw2, (H, E), dtype=jnp.float32) * (1.0 / math.sqrt(H))
    b2 = jax.random.normal(kb2, (E,), dtype=jnp.float32) * 0.01

    # th=256 forces two H steps so the accumulator init/writeback path is exercised.
    y = feedforward(x, w1, b1, w2, b2, th=256)
    jax.block_until_ready(y)

    y_ref = feedforward_ref(x, w1, b1, w2, b2)
    max_err = float(jnp.max(jnp.abs(y - y_ref)))
    # bf16 MXU inputs with f32 accumulation -> loosened tolerance vs the f32 reference.
    assert jnp.allclose(y, y_ref, atol=5e-2, rtol=5e-2), f"mismatch vs reference (max abs err {max_err})"

    print("KERNEL_OK")
</pallas_src>

<mosaic_0001>
module attributes {stable_mosaic.version = 11 : i64} {
  func.func @_ff_kernel(%arg0: i32, %arg1: i32, %arg2: memref<128x128xbf16, #tpu.memory_space<vmem>>, %arg3: memref<128x256xbf16, #tpu.memory_space<vmem>>, %arg4: memref<1x256xf32, #tpu.memory_space<vmem>>, %arg5: memref<256x128xbf16, #tpu.memory_space<vmem>>, %arg6: memref<1x128xf32, #tpu.memory_space<vmem>>, %arg7: memref<128x128xf32, #tpu.memory_space<vmem>>, %arg8: memref<128x128xf32, #tpu.memory_space<vmem>>) attributes {dimension_semantics = [#tpu.dimension_semantics<parallel>, #tpu.dimension_semantics<arbitrary>], iteration_bounds = array<i64: 1, 2>, scalar_prefetch = 0 : i64, scratch_operands = 1 : i64, tpu.core_type = #tpu.core_type<tc>, window_params = [{transform_indices = @transform_0, window_bounds = array<i64: 128, 128>}, {transform_indices = @transform_1, window_bounds = array<i64: 128, 256>}, {transform_indices = @transform_2, window_bounds = array<i64: 1, 256>}, {transform_indices = @transform_3, window_bounds = array<i64: 256, 128>}, {pipeline_mode = #tpu.pipeline_mode<synchronous>, transform_indices = @transform_4, window_bounds = array<i64: 1, 128>}, {transform_indices = @transform_5, window_bounds = array<i64: 128, 128>}]} {
    %c0_i32 = arith.constant 0 : i32
    %0 = arith.cmpi eq, %arg1, %c0_i32 : i32
    %1 = arith.extui %0 : i1 to i32
    %c0_i32_0 = arith.constant 0 : i32
    %2 = arith.cmpi ne, %1, %c0_i32_0 : i32
    scf.if %2 {
      %c0_18 = arith.constant 0 : index
      %c0_19 = arith.constant 0 : index
      %31 = vector.load %arg6[%c0_18, %c0_19] : memref<1x128xf32, #tpu.memory_space<vmem>>, vector<1x128xf32>
      %32 = vector.shape_cast %31 : vector<1x128xf32> to vector<1x128xf32>
      %33 = vector.broadcast %32 : vector<1x128xf32> to vector<128x128xf32>
      %c0_20 = arith.constant 0 : index
      %c0_21 = arith.constant 0 : index
      %34 = vector.load %arg8[%c0_20, %c0_21] : memref<128x128xf32, #tpu.memory_space<vmem>>, vector<128x128xf32>
      tpu.vector_store %arg8[%c0_20, %c0_21], %33 {strides = array<i32>} : memref<128x128xf32, #tpu.memory_space<vmem>>, vector<128x128xf32>,
    } else {
    }
    %c0 = arith.constant 0 : index
    %c0_1 = arith.constant 0 : index
    %3 = vector.load %arg2[%c0, %c0_1] : memref<128x128xbf16, #tpu.memory_space<vmem>>, vector<128x128xbf16>
    %c0_2 = arith.constant 0 : index
    %c0_3 = arith.constant 0 : index
    %4 = vector.load %arg3[%c0_2, %c0_3] : memref<128x256xbf16, #tpu.memory_space<vmem>>, vector<128x256xbf16>
    %cst = arith.constant dense<0.000000e+00> : vector<128x256xf32>
    %5 = tpu.matmul %3, %4, %cst {dimension_numbers = #tpu.dot_dimension_numbers<[1], [0], [0], [1], [0, 0, 1, 1], [], []>} : vector<128x128xbf16>, vector<128x256xbf16>, vector<128x256xf32> -> vector<128x256xf32>
    %c0_4 = arith.constant 0 : index
    %c0_5 = arith.constant 0 : index
    %6 = vector.load %arg4[%c0_4, %c0_5] : memref<1x256xf32, #tpu.memory_space<vmem>>, vector<1x256xf32>
    %7 = vector.broadcast %6 : vector<1x256xf32> to vector<128x256xf32>
    %8 = arith.addf %5, %7 : vector<128x256xf32>
    %cst_6 = arith.constant 5.000000e-01 : f32
    %9 = vector.broadcast %cst_6 : f32 to vector<128x256xf32>
    %10 = arith.mulf %9, %8 : vector<128x256xf32>
    %11 = arith.mulf %8, %8 : vector<128x256xf32>
    %12 = arith.mulf %11, %8 : vector<128x256xf32>
    %cst_7 = arith.constant 4.471500e-01 : f32
    %13 = vector.broadcast %cst_7 : f32 to vector<128x256xf32>
    %14 = arith.mulf %13, %12 : vector<128x256xf32>
    %15 = arith.addf %8, %14 : vector<128x256xf32>
    %cst_8 = arith.constant 0.797884583 : f32
    %16 = vector.broadcast %cst_8 : f32 to vector<128x256xf32>
    %17 = arith.mulf %16, %15 : vector<128x256xf32>
    %18 = math.tanh %17 : vector<128x256xf32>
    %cst_9 = arith.constant 1.000000e+00 : f32
    %19 = vector.broadcast %cst_9 : f32 to vector<128x256xf32>
    %20 = arith.addf %19, %18 : vector<128x256xf32>
    %21 = arith.mulf %10, %20 : vector<128x256xf32>
    %c0_10 = arith.constant 0 : index
    %c0_11 = arith.constant 0 : index
    %22 = vector.load %arg8[%c0_10, %c0_11] : memref<128x128xf32, #tpu.memory_space<vmem>>, vector<128x128xf32>
    %23 = arith.truncf %21 : vector<128x256xf32> to vector<128x256xbf16>
    %c0_12 = arith.constant 0 : index
    %c0_13 = arith.constant 0 : index
    %24 = vector.load %arg5[%c0_12, %c0_13] : memref<256x128xbf16, #tpu.memory_space<vmem>>, vector<256x128xbf16>
    %cst_14 = arith.constant dense<0.000000e+00> : vector<128x128xf32>
    %25 = tpu.matmul %23, %24, %cst_14 {dimension_numbers = #tpu.dot_dimension_numbers<[1], [0], [0], [1], [0, 0, 1, 1], [], []>} : vector<128x256xbf16>, vector<256x128xbf16>, vector<128x128xf32> -> vector<128x128xf32>
    %26 = arith.addf %22, %25 : vector<128x128xf32>
    %c0_15 = arith.constant 0 : index
    %c0_16 = arith.constant 0 : index
    %27 = vector.load %arg8[%c0_15, %c0_16] : memref<128x128xf32, #tpu.memory_space<vmem>>, vector<128x128xf32>
    tpu.vector_store %arg8[%c0_15, %c0_16], %26 {strides = array<i32>} : memref<128x128xf32, #tpu.memory_space<vmem>>, vector<128x128xf32>,
    %c1_i32 = arith.constant 1 : i32
    %28 = arith.cmpi eq, %arg1, %c1_i32 : i32
    %29 = arith.extui %28 : i1 to i32
    %c0_i32_17 = arith.constant 0 : i32
    %30 = arith.cmpi ne, %29, %c0_i32_17 : i32
    scf.if %30 {
      %c0_18 = arith.constant 0 : index
      %c0_19 = arith.constant 0 : index
      %31 = vector.load %arg8[%c0_18, %c0_19] : memref<128x128xf32, #tpu.memory_space<vmem>>, vector<128x128xf32>
      %c0_20 = arith.constant 0 : index
      %c0_21 = arith.constant 0 : index
      %32 = vector.load %arg7[%c0_20, %c0_21] : memref<128x128xf32, #tpu.memory_space<vmem>>, vector<128x128xf32>
      tpu.vector_store %arg7[%c0_20, %c0_21], %31 {strides = array<i32>} : memref<128x128xf32, #tpu.memory_space<vmem>>, vector<128x128xf32>,
    } else {
    }
    return
  }
  func.func @transform_0(%arg0: i32, %arg1: i32) -> (i32, i32) {
    %c0_i32 = arith.constant 0 : i32
    %c0_i32_0 = arith.constant 0 : i32
    return %arg0, %c0_i32 : i32, i32
  }
  func.func @transform_1(%arg0: i32, %arg1: i32) -> (i32, i32) {
    %c0_i32 = arith.constant 0 : i32
    %c0_i32_0 = arith.constant 0 : i32
    return %c0_i32, %arg1 : i32, i32
  }
  func.func @transform_2(%arg0: i32, %arg1: i32) -> (i32, i32) {
    %c0_i32 = arith.constant 0 : i32
    %c0_i32_0 = arith.constant 0 : i32
    return %c0_i32, %arg1 : i32, i32
  }
  func.func @transform_3(%arg0: i32, %arg1: i32) -> (i32, i32) {
    %c0_i32 = arith.constant 0 : i32
    %c0_i32_0 = arith.constant 0 : i32
    return %arg1, %c0_i32 : i32, i32
  }
  func.func @transform_4(%arg0: i32, %arg1: i32) -> (i32, i32) {
    %c0_i32 = arith.constant 0 : i32
    %c0_i32_0 = arith.constant 0 : i32
    %c0_i32_1 = arith.constant 0 : i32
    return %c0_i32, %c0_i32_0 : i32, i32
  }
  func.func @transform_5(%arg0: i32, %arg1: i32) -> (i32, i32) {
    %c0_i32 = arith.constant 0 : i32
    %c0_i32_0 = arith.constant 0 : i32
    return %arg0, %c0_i32 : i32, i32
  }
}

</mosaic_0001>

<bundles_post_ra>
// kernel: tpu_custom_call.1
= control target key start
LH: loop header
LB: loop body
LE: loop exit
PB: predicated region body
PF: predicated region fallthrough
CT: control target
= control target key end

     0   :  { %s2463_s0 = inlined_call_operand.hbm [shape: bf16[128,128], index: 0, kind: input, shape index: {}]   ;;  %s2464_s1 = inlined_call_operand.hbm [shape: bf16[128,512], index: 1, kind: input, shape index: {}]   ;;  %s2465_s2 = inlined_call_operand.vmem [shape: f32[1,512], index: 2, kind: input, shape index: {}]   ;;  %s2466_s3 = inlined_call_operand.hbm [shape: bf16[512,128], index: 3, kind: input, shape index: {}]   ;;  %s2467_s4 = inlined_call_operand.vmem [shape: f32[1,128], index: 4, kind: input, shape index: {}]   ;;  %s2468_s5 = inlined_call_operand.hbm [shape: f32[128,128], index: 5, kind: output, shape index: {}]  }
   0x1   :  { %2475 = sst [smem:[#allocation13_spill]] %s2464_s1 }
   0x2   :  { %10 = vsyncpa [#allocation4], 0 }
   0x3   :  { %11 = vsyncpa [#allocation7], 0 }
   0x4   :  { %13 = vsyncpa [#allocation7 + $0x1], 0 }
   0x5   :  { %14 = vsyncpa [#allocation5], 0  ;;  %s1915_s18 = smov 0   ;;  %s1917_s19 = smov 0  }
   0x6   :  { %s1919_s20 = smov 0   ;;  %s1921_s21 = smov 0  }
   0x7   :  { %s1923_s22 = smov 0   ;;  %s1925_s23 = smov 0  }
   0x8 LB: > { %s29_s24 = sadd.s32 1, %s1867_s22  ;;  %s65_s25 = sadd.s32 1, %s1859_s20  ;;  %s1871_s23 = sphi %s1925_s23, %s20_s23   ;;  %s1867_s22 = sphi %s1923_s22, %s2492_s22   ;;  %s1863_s21 = sphi %s1921_s21, %s2491_s21   ;;  %s1859_s20 = sphi %s1919_s20, %s2490_s20   ;;  %s1855_s19 = sphi %s1917_s19, %s2489_s19   ;;  %s1851_s18 = sphi %s1915_s18, %s2488_s18  }
   0x9   : > { %p30_p0 = scmp.ge.s32.totalorder %s29_s24, 2  ;;  %p72_p1 = scmp.ne.s32.totalorder %s1859_s20, %s1855_s19 }
   0xa   : > { %p73_p2 = scmp.eq.s32.totalorder %s1871_s23, 0  ;;  %p1525_p4 = scmp.lt.s32.totalorder %s1871_s23, 2 }
   0xb   : > { %s2494_s24 = smov (%p30_p0, %s29_s24), 0  ;;  %s220_s27 = sand.u32 1, %s1871_s23  }
   0xc   : > { %p74_p3 = por %p73_p2, %p72_p1  ;;  %s62_s26 = ssub.s32 %s1867_s22, %s2494_s24 }
   0xd   : > { %p63_p5 = scmp.eq.s32.totalorder %s62_s26, 0  ;;  %s222_s28 = sand.u32 1, %s1859_s20  }
   0xe   : > { %s1435_s29 = sshll.u32 %s1867_s22, 7  ;;  %s1961_s6 = sshll.u32 %s222_s28, 7 }
   0xf   : > { %s1959_s30 = scalar_select %p63_p5, %s1859_s20, %s65_s25  }
  0x10   : > { %s2476_s1 = sld [smem:[#allocation13_spill]]  ;;  %p1968_p6 = pnand %p1525_p4, %p74_p3 }
  0x11   : > { %s224_s11 = scalar_lea.vmem [#allocation6], %s1961_s6  ;;  %s1975_s13 = scalar_lea.sflag [#allocation7], %s220_s27 }
  0x12   : > { %s2477_s10 = scalar_select %p1968_p6, 1, 0 }
  0x13   : > { %s231_s12 = sshll.u32 %s224_s11, 4  ;;  %p2470_p8 = pneg %p1968_p6  ;;  %s1973_s12 = int_to_ptr.vmem [resolvable:$true] %s231_s12 }
  0x16   : > { %s1966_s9 = scalar_lea.hbm %s2476_s1, %s1435_s29  ;;  %s1704_s17 = scalar_lea.hbm %s2476_s1, 4096 }
  0x17   : > { %s1699_s14 = scalar_lea.hbm %s1966_s9, 2048  ;;  %p1705_p11 = scmp.lt.u32.totalorder %s1966_s9, %s2476_s1 }
  0x18   : > { %p1700_p7 = scmp.ne.s32.totalorder %s1966_s9, %s1699_s14  ;;  %p1706_p12 = scmp.lt.u32.totalorder %s1704_s17, %s1699_s14 }
  0x19   : > { %p1708_p0 = scmp.lt.u32.totalorder %s1699_s14, %s1966_s9 }
  0x1a   : > { %p1702_p9 = pnand %p2470_p8, %p1700_p7  ;;  %p1707_p13 = por %p1706_p12, %p1705_p11 }
  0x1c   : > { %p1703_p10 = pneg %p1702_p9  ;;  %p1709_p1 = por %p1708_p0, %p1707_p13 }
  0x1e   : > { %p1710_p2 = pnand %p1709_p1, %p1703_p10 }
  0x20   : > { %1713 = shalt.err (!%p1710_p2)
}
  0x21   : > { %s1714_s27 = scalar_lea.vmem %s1973_s12, 2048  ;;  %s1873_s28 = smov [#allocation6]  }
  0x22   : > { %p1715_p3 = scmp.ne.s32.totalorder %s1973_s12, %s1714_s27  ;;  %s1719_s29 = sshll.u32 %s1873_s28, 4  ;;  %s1720_s29 = int_to_ptr.vmem [resolvable:$false] %s1719_s29 }
  0x23   : > { %s1721_s7 = scalar_lea.vmem %s1720_s29, 4096  ;;  %p1722_p7 = scmp.lt.s32.totalorder %s1973_s12, %s1720_s29 }
  0x24   : > { %p1717_p4 = pnand %p1715_p3, %p2470_p8  ;;  %p1723_p9 = scmp.lt.s32.totalorder %s1721_s7, %s1714_s27 }
  0x26   : > { %p1718_p5 = pneg %p1717_p4  ;;  %p1724_p11 = por %p1723_p9, %p1722_p7 }
  0x28   : > { %p1725_p12 = pnand %p1724_p11, %p1718_p5 }
  0x2a   : > { %1728 = shalt.err (!%p1725_p12)
}
  0x2b   : > { %s1874_s8 = smov 256   ;;  %s1875_s11 = smov 128  }
  0x2c   : > { %s1876_s14 = smov 8   ;;  %s2004_s15 = sadd.s32 4294967295, %s1871_s23  }
  0x2d   : > { %1520 = dma.hbm_to_vmem [thread:$0]  (!%p1968_p6), %s1966_s9, 2048, %s1973_s12, %s1975_s13, %s1874_s8, %s1875_s11, %s1876_s14  }
  0x2e   : > { %p78_p10 = scmp.ne.s32.totalorder %s1855_s19, %s1851_s18  ;;  %p2469_p13 = scmp.eq.s32.totalorder %s2004_s15, 0 }
  0x2f   : > { %p1374_p0 = scmp.ge.s32.totalorder %s1871_s23, 1  ;;  %p188_p1 = scmp.lt.s32.totalorder %s1871_s23, 3 }
  0x30   : > { %p2013_p2 = por %p2469_p13, %p78_p10  ;;  %s1877_s9 = smov [#allocation3]  }
  0x31   : > { %p2017_p3 = pnand %p1374_p0, %p188_p1  ;;  %s203_s12 = sshll.u32 %s1877_s9, 4  ;;  %s2021_s12 = int_to_ptr.vmem [resolvable:$true] %s203_s12 }
  0x32   : > { %s2478_s16 = scalar_select %p2013_p2, 1, 0 }
  0x33   : > { %s2479_s17 = scalar_select %p2017_p3, 1, 0 }
  0x34   : > { %p1513_p4 = pneg %p2017_p3  ;;  %s1436_s18 = sshll.u32 %s1867_s22, 11 }
  0x35   : > { %s2035_s28 = scalar_lea.hbm %s2466_s3, %s1436_s18  ;;  %s253_s29 = scalar_lea.vmem [#allocation8], %s1961_s6 }
  0x36   : > { %p2028_p5 = pnand %p1513_p4, %p2469_p13  ;;  %s260_s7 = sshll.u32 %s253_s29, 4  ;;  %s2038_s7 = int_to_ptr.vmem [resolvable:$true] %s260_s7 }
  0x37   : > { %s1729_s14 = scalar_lea.hbm %s2463_s0, 1024 }
  0x38   : > { %p1730_p7 = scmp.ne.s32.totalorder %s2463_s0, %s1729_s14  ;;  %p1731_p9 = pneg %p2028_p5 }
  0x39   : > { %p1736_p10 = scmp.lt.u32.totalorder %s1729_s14, %s2463_s0 }
  0x3a   : > { %p1732_p11 = pnand %p1731_p9, %p1730_p7 }
  0x3c   : > { %p1733_p12 = pneg %p1732_p11 }
  0x3e   : > { %p1738_p0 = pnand %p1736_p10, %p1733_p12 }
  0x40   : > { %1741 = shalt.err (!%p1738_p0)
}
  0x41   : > { %s1742_s6 = scalar_lea.vmem %s2021_s12, 1024  ;;  %p1750_p8 = scmp.lt.s32.totalorder %s2021_s12, %s2021_s12 }
  0x42   : > { %p1743_p1 = scmp.ne.s32.totalorder %s2021_s12, %s1742_s6  ;;  %p1751_p2 = scmp.lt.s32.totalorder %s1742_s6, %s1742_s6 }
  0x44   : > { %p1745_p4 = pnand %p1743_p1, %p1731_p9  ;;  %p1752_p3 = por %p1751_p2, %p1750_p8 }
  0x46   : > { %p1746_p13 = pneg %p1745_p4 }
  0x48   : > { %p1753_p6 = pnand %p1752_p3, %p1746_p13 }
  0x4a   : > { %1756 = shalt.err (!%p1753_p6)
}
  0x4b   : > { %s1878_s1 = smov 64   ;;  %s1879_s18 = smov 4  }
  0x4c   : > { %1516 = dma.hbm_to_vmem [thread:$0]  (!%p2028_p5), %s2463_s0, 1024, %s2021_s12, [#allocation4], %s1878_s1, %s1878_s1, %s1879_s18  }
  0x4d   : > { %s1757_s11 = scalar_lea.hbm %s2035_s28, 2048  ;;  %p2481_p6 = scmp.ne.s32.totalorder %s2477_s10, 0 }
  0x4e   : > { %p1758_p8 = scmp.ne.s32.totalorder %s2035_s28, %s1757_s11  ;;  %s1762_s26 = scalar_lea.hbm %s2466_s3, 4096 }
  0x4f   : > { %p2482_p13 = pneg %p2481_p6  ;;  %p1763_p7 = scmp.lt.u32.totalorder %s2035_s28, %s2466_s3 }
  0x50   : > { %p1764_p9 = scmp.lt.u32.totalorder %s1762_s26, %s1757_s11  ;;  %p1766_p12 = scmp.lt.u32.totalorder %s1757_s11, %s2035_s28 }
  0x51   : > { %p1760_p2 = pnand %p1758_p8, %p2482_p13 }
  0x52   : > { %p1765_p11 = por %p1764_p9, %p1763_p7 }
  0x53   : > { %p1761_p3 = pneg %p1760_p2 }
  0x54   : > { %p1767_p10 = por %p1766_p12, %p1765_p11 }
  0x56   : > { %p1768_p0 = pnand %p1767_p10, %p1761_p3 }
  0x58   : > { %1771 = shalt.err (!%p1768_p0)
}
  0x59   : > { %s1772_s12 = scalar_lea.vmem %s2038_s7, 2048  ;;  %p2483_p1 = pmov %p2482_p13 }
  0x5a   : > { %p1773_p5 = scmp.ne.s32.totalorder %s2038_s7, %s1772_s12  ;;  %s1880_s25 = smov [#allocation8]  }
  0x5b   : > { %s1777_s29 = sshll.u32 %s1880_s25, 4  ;;  %s1778_s29 = int_to_ptr.vmem [resolvable:$false] %s1777_s29 }
  0x5c   : > { %p1775_p4 = pnand %p1773_p5, %p2483_p1  ;;  %s1779_s8 = scalar_lea.vmem %s1778_s29, 4096 }
  0x5d   : > { %p1780_p13 = scmp.lt.s32.totalorder %s2038_s7, %s1778_s29  ;;  %p1781_p2 = scmp.lt.s32.totalorder %s1779_s8, %s1772_s12 }
  0x5e   : > { %p1776_p8 = pneg %p1775_p4 }
  0x5f   : > { %p1782_p7 = por %p1781_p2, %p1780_p13 }
  0x61   : > { %p1783_p9 = pnand %p1782_p7, %p1776_p8 }
  0x63   : > { %1786 = shalt.err (!%p1783_p9)
}
  0x64   : > { %1523 = dma.hbm_to_vmem [thread:$0]  (!%p2481_p6), %s2035_s28, 2048, %s2038_s7, %s1975_s13, %s1878_s1, %s1878_s1, %s1879_s18  }
  0x65   : > { %p2484_p3 = scmp.ne.s32.totalorder %s2479_s17, 0 }
  0x66   : > { %p2485_p11 = scmp.eq.s32.totalorder (!%p2484_p3), %s2004_s15, 0 }
  0x67   : > { %272 = sbr.rel (%p2484_p3) target bundleno = 733 (0x2dd), region = 40 }
  0x6e   : > { %1838 = dma.done.wait (%p2485_p11), [#allocation4], 1024   ;;  %p2486_p12 = pmov %p2485_p11 }
  0x6f   : > { %s278_s10 = sand.u32 1, %s2004_s15   ;;  %s280_s11 = sand.u32 1, %s1855_s19  }
  0x70   : > { %1840 = vsyncadd (%p2486_p12), [#allocation4], 4294966272  ;;  %s1385_s14 = sshll.u32 %s280_s11, 7  ;;  %s279_s9 = scalar_lea.sflag [#allocation7], %s278_s10 }
  0x71   : > { %s2099_s26 = scalar_lea.vmem [#allocation6], %s1385_s14  ;;  %p2487_p10 = scmp.ne.s32.totalorder %s2478_s16, 0 }
  0x73   : > { %1842 = dma.done.wait (%p2487_p10), %s279_s9, 4096  }
  0x74   : > { %1844 = vsyncadd (%p2487_p10), %s279_s9, 4294963200  ;;  %s1387_s13 = sshll.u32 %s1863_s21, 1  ;;  %s2112_s1 = scalar_lea.vmem [#allocation8], %s1385_s14 }
  0x75   : > { %p325_p6 = scmp.lt.s32.totalorder %s1387_s13, 3  ;;  %p1388_p0 = scmp.ne.s32.totalorder %s1863_s21, 0 }
  0x76   : > { %v1389_v0 = vld [vmem:[%s2467_s4] ss:$0 sm:$0xff] (!%p1388_p0) }
  0x77   : > { %s2496_s13 = smov (!%p325_p6, %s1387_s13), 3  ;;  %335 = sbr.rel (%p1388_p0) target bundleno = 128 (0x80), region = 56 }
  0x78   : > { %s327_s7 = scalar_lea.vmem %s2465_s2, %s2496_s13  ;;  %343 = vst [vmem:[#allocation2] sm:$0xff] (!%p1388_p0), %v1389_v0  ;;  %344 = vst [vmem:[#allocation2 + $0x8] sm:$0xff] (!%p1388_p0), %v1389_v0 }
  0x79   : > { %345 = vst [vmem:[#allocation2 + $0x10] sm:$0xff] (!%p1388_p0), %v1389_v0  ;;  %346 = vst [vmem:[#allocation2 + $0x18] sm:$0xff] (!%p1388_p0), %v1389_v0 }
  0x7a   : > { %347 = vst [vmem:[#allocation2 + $0x20] sm:$0xff] (!%p1388_p0), %v1389_v0  ;;  %348 = vst [vmem:[#allocation2 + $0x28] sm:$0xff] (!%p1388_p0), %v1389_v0 }
  0x7b   : > { %349 = vst [vmem:[#allocation2 + $0x30] sm:$0xff] (!%p1388_p0), %v1389_v0  ;;  %350 = vst [vmem:[#allocation2 + $0x38] sm:$0xff] (!%p1388_p0), %v1389_v0 }
  0x7c   : > { %351 = vst [vmem:[#allocation2 + $0x40] sm:$0xff] (!%p1388_p0), %v1389_v0  ;;  %352 = vst [vmem:[#allocation2 + $0x48] sm:$0xff] (!%p1388_p0), %v1389_v0 }
  0x7d   : > { %353 = vst [vmem:[#allocation2 + $0x50] sm:$0xff] (!%p1388_p0), %v1389_v0  ;;  %354 = vst [vmem:[#allocation2 + $0x58] sm:$0xff] (!%p1388_p0), %v1389_v0 }
  0x7e   : > { %355 = vst [vmem:[#allocation2 + $0x60] sm:$0xff] %v1389_v0  ;;  %356 = vst [vmem:[#allocation2 + $0x68] sm:$0xff] %v1389_v0 }
  0x7f   : > { %357 = vst [vmem:[#allocation2 + $0x70] sm:$0xff] %v1389_v0  ;;  %358 = vst [vmem:[#allocation2 + $0x78] sm:$0xff] %v1389_v0 }
  0x80 PF: > { %v1587_v1 = vld [vmem:[%s2099_s26 + $0x4] ss:$8 sps:$4 sm:$0xff]   ;;  %v1589_v2 = vld [vmem:[%s2099_s26] ss:$8 sps:$4 sm:$0xff]   ;;  %v1881_v3 = vmov 0   ;;  %v1613_v20 = vld [vmem:[#allocation3 + $0x10] sm:$0xff]   ;;  %v393_v42 = vlaneseq }
  0x81   : > { %563 = vmatprep.mubr.bf16.mxu0 %v1881_v3  ;;  %531 = vmatprep.subr.bf16.mxu0 %v1587_v1  ;;  %v1590_v4 = vld [vmem:[%s2099_s26 + $0x14] ss:$8 sps:$4 sm:$0xff]   ;;  %v1592_v5 = vld [vmem:[%s2099_s26 + $0x10] ss:$8 sps:$4 sm:$0xff]   ;;  %v1593_v6 = vld [vmem:[%s2099_s26 + $0x24] ss:$8 sps:$4 sm:$0xff]  }
  0x82   : > { %532 = vmatpush1.bf16.msra.mxu0 %v1589_v2  ;;  %v1595_v7 = vld [vmem:[%s2099_s26 + $0x20] ss:$8 sps:$4 sm:$0xff]   ;;  %v1596_v8 = vld [vmem:[%s2099_s26 + $0x34] ss:$8 sps:$4 sm:$0xff]   ;;  %v1598_v9 = vld [vmem:[%s2099_s26 + $0x30] ss:$8 sps:$4 sm:$0xff]  }
  0x83   : > { %533 = vmatprep.subr.bf16.mxu0 %v1590_v4  ;;  %v1599_v10 = vld [vmem:[%s2099_s26 + $0x44] ss:$8 sps:$4 sm:$0xff]   ;;  %v1601_v11 = vld [vmem:[%s2099_s26 + $0x40] ss:$8 sps:$4 sm:$0xff]   ;;  %v1602_v12 = vld [vmem:[%s2099_s26 + $0x54] ss:$8 sps:$4 sm:$0xff]  }
  0x84   : > { %v1604_v13 = vld [vmem:[%s2099_s26 + $0x50] ss:$8 sps:$4 sm:$0xff]   ;;  %v1605_v14 = vld [vmem:[%s2099_s26 + $0x64] ss:$8 sps:$4 sm:$0xff]   ;;  %v1607_v15 = vld [vmem:[%s2099_s26 + $0x60] ss:$8 sps:$4 sm:$0xff]  }
  0x85   : > { %v1608_v16 = vld [vmem:[%s2099_s26 + $0x74] ss:$8 sps:$4 sm:$0xff]   ;;  %v1610_v17 = vld [vmem:[%s2099_s26 + $0x70] ss:$8 sps:$4 sm:$0xff]   ;;  %v1611_v18 = vld [vmem:[#allocation3] sm:$0xff]   ;;  %v394_v43 = vshrl.u32 %v393_v42, 7 }
  0x86   : > { %534 = vmatpush1.bf16.msra.mxu0 %v1592_v5  ;;  %v1612_v19 = vld [vmem:[#allocation3 + $0x8] sm:$0xff]   ;;  %v1614_v21 = vld [vmem:[#allocation3 + $0x18] sm:$0xff]   ;;  %v1615_v22 = vld [vmem:[#allocation3 + $0x20] sm:$0xff]   ;;  %p1430_p5 = scmp.ne.s32.totalorder %s1863_s21, 1 }
  0x87   : > { %535 = vmatprep.subr.bf16.mxu0 %v1593_v6  ;;  %v1616_v23 = vld [vmem:[#allocation3 + $0x28] sm:$0xff]   ;;  %v1617_v24 = vld [vmem:[#allocation3 + $0x30] sm:$0xff]   ;;  %v1618_v25 = vld [vmem:[#allocation3 + $0x38] sm:$0xff]   ;;  %v395_v44 = vsub.s32 0, %v394_v43  ;;  %v399_v46 = vsub.s32 1, %v394_v43 }
  0x88   : > { %v1619_v26 = vld [vmem:[%s2112_s1 + $0x40] sm:$0xff]   ;;  %v1621_v28 = vld [vmem:[%s2112_s1 + $0x48] sm:$0xff]   ;;  %v1623_v30 = vld [vmem:[%s2112_s1 + $0x50] sm:$0xff]  }
  0x89   : > { %v1620_v27 = vld [vmem:[%s2112_s1] sm:$0xff]   ;;  %1437 = vmatprep.subr.bf16.mxu1 %v1619_v26  ;;  %v1622_v29 = vld [vmem:[%s2112_s1 + $0x8] sm:$0xff]   ;;  %v1624_v31 = vld [vmem:[%s2112_s1 + $0x10] sm:$0xff]  }
  0x8a   : > { %536 = vmatpush1.bf16.msra.mxu0 %v1595_v7  ;;  %1438 = vmatpush3.bf16.msra.mxu1 %v1620_v27  ;;  %v1625_v32 = vld [vmem:[%s2112_s1 + $0x58] sm:$0xff]   ;;  %v1627_v34 = vld [vmem:[%s2112_s1 + $0x60] sm:$0xff]   ;;  %v1629_v36 = vld [vmem:[%s2112_s1 + $0x68] sm:$0xff]  }
  0x8b   : > { %537 = vmatprep.subr.bf16.mxu0 %v1596_v8  ;;  %1439 = vmatprep.subr.bf16.mxu1 %v1621_v28  ;;  %v1626_v33 = vld [vmem:[%s2112_s1 + $0x18] sm:$0xff]   ;;  %v1628_v35 = vld [vmem:[%s2112_s1 + $0x20] sm:$0xff]   ;;  %v1630_v37 = vld [vmem:[%s2112_s1 + $0x28] sm:$0xff]  }
  0x8c   : > { %v1631_v38 = vld [vmem:[%s2112_s1 + $0x70] sm:$0xff]   ;;  %v1633_v40 = vld [vmem:[%s2112_s1 + $0x78] sm:$0xff]   ;;  %v391_v45 = vld [vmem:[%s327_s7] sm:$0x3] }
  0x8d   : > { %v1632_v39 = vld [vmem:[%s2112_s1 + $0x30] sm:$0xff]   ;;  %v1634_v41 = vld [vmem:[%s2112_s1 + $0x38] sm:$0xff]   ;;  %v2155_v47 = vrot.slane %v391_v45, %v395_v44  ;;  %v2157_v48 = vrot.slane %v391_v45, %v399_v46 }
  0x8e   : > { %538 = vmatpush1.bf16.msra.mxu0 %v1598_v9  ;;  %1440 = vmatpush3.bf16.msra.mxu1 %v1622_v29 }
  0x8f   : > { %539 = vmatprep.subr.bf16.mxu0 %v1599_v10  ;;  %1441 = vmatprep.subr.bf16.mxu1 %v1623_v30 }
  0x92   : > { %540 = vmatpush1.bf16.msra.mxu0 %v1601_v11  ;;  %1442 = vmatpush3.bf16.msra.mxu1 %v1624_v31 }
  0x93   : > { %541 = vmatprep.subr.bf16.mxu0 %v1602_v12  ;;  %1443 = vmatprep.subr.bf16.mxu1 %v1625_v32 }
  0x96   : > { %542 = vmatpush1.bf16.msra.mxu0 %v1604_v13  ;;  %1444 = vmatpush3.bf16.msra.mxu1 %v1626_v33 }
  0x97   : > { %543 = vmatprep.subr.bf16.mxu0 %v1605_v14  ;;  %1445 = vmatprep.subr.bf16.mxu1 %v1627_v34 }
  0x9a   : > { %544 = vmatpush1.bf16.msra.mxu0 %v1607_v15  ;;  %1446 = vmatpush3.bf16.msra.mxu1 %v1628_v35 }
  0x9b   : > { %545 = vmatprep.subr.bf16.mxu0 %v1608_v16  ;;  %1447 = vmatprep.subr.bf16.mxu1 %v1629_v36 }
  0x9e   : > { %546 = vmatpush1.bf16.msra.mxu0 %v1610_v17  ;;  %1448 = vmatpush3.bf16.msra.mxu1 %v1630_v37 }
  0x9f   : > { %1449 = vmatprep.subr.bf16.mxu1 %v1631_v38 }
  0xa1   : > { %564 = vmatmul.mubr.bf16.vlgmr.msra.gmra.mrb[0].mxu0 %v1611_v18 }
  0xa2   : > { %573 = vmatprep.mubr.bf16.mxu0 %v1881_v3  ;;  %1450 = vmatpush3.bf16.msra.mxu1 %v1632_v39 }
  0xa3   : > { %1451 = vmatprep.subr.bf16.mxu1 %v1633_v40 }
  0xa6   : > { %1452 = vmatpush3.bf16.msra.mxu1 %v1634_v41 }
  0xa9   : > { %574 = vmatmul.mubr.bf16.gmra.mrb[4].mxu0 %v1612_v19 }
  0xaa   : > { %583 = vmatprep.mubr.bf16.mxu0 %v1881_v3 }
  0xb1   : > { %584 = vmatmul.mubr.bf16.gmra.mrb[8].mxu0 %v1613_v20 }
  0xb2   : > { %593 = vmatprep.mubr.bf16.mxu0 %v1881_v3 }
  0xb9   : > { %594 = vmatmul.mubr.bf16.gmra.mrb[12].mxu0 %v1614_v21 }
  0xba   : > { %603 = vmatprep.mubr.bf16.mxu0 %v1881_v3 }
  0xc1   : > { %604 = vmatmul.mubr.bf16.gmra.mrb[16].mxu0 %v1615_v22 }
  0xc2   : > { %613 = vmatprep.mubr.bf16.mxu0 %v1881_v3 }
  0xc9   : > { %614 = vmatmul.mubr.bf16.gmra.mrb[20].mxu0 %v1616_v23 }
  0xca   : > { %623 = vmatprep.mubr.bf16.mxu0 %v1881_v3 }
  0xd1   : > { %624 = vmatmul.mubr.bf16.gmra.mrb[24].mxu0 %v1617_v24 }
  0xd2   : > { %633 = vmatprep.mubr.bf16.mxu0 %v1881_v3 }
  0xd9   : > { %634 = vmatmul.mubr.bf16.gmra.mrb[28].mxu0 %v1618_v25 }
 0x174   : > { %v565_v49 = vpop.f32.mrb[0].mxu0 }
 0x175   : > { %v566_v50 = vadd.f32 %v565_v49, %v2155_v47  ;;  %v567_v51 = vpop.f32.mrb[1].mxu0 }
 0x176   : > { %v568_v52 = vadd.f32 %v567_v51, %v2157_v48  ;;  %v569_v53 = vpop.f32.mrb[2].mxu0 }
 0x177   : > { %v676_v54 = vmul.f32 %v566_v50, %v566_v50  ;;  %v570_v55 = vadd.f32 %v569_v53, %v2155_v47  ;;  %v571_v56 = vpop.f32.mrb[3].mxu0  ;;  %v2165_v5 = vmul.f32 0.5, %v566_v50 }
 0x178   : > { %v677_v57 = vmul.f32 %v568_v52, %v568_v52  ;;  %v572_v58 = vadd.f32 %v571_v56, %v2157_v48  ;;  %v2163_v4 = vmul.f32 0.5, %v568_v52 }
 0x179   : > { %v708_v59 = vmul.f32 %v676_v54, %v566_v50  ;;  %v678_v60 = vmul.f32 %v570_v55, %v570_v55  ;;  %v2168_v10 = vmul.f32 0.5, %v570_v55 }
 0x17a   : > { %v709_v61 = vmul.f32 %v677_v57, %v568_v52  ;;  %v679_v62 = vmul.f32 %v572_v58, %v572_v58  ;;  %v2171_v14 = vmul.f32 0.5, %v572_v58 }
 0x17b   : > { %v740_v63 = vmul.f32 0.44715, %v708_v59  ;;  %v710_v0 = vmul.f32 %v678_v60, %v570_v55 }
 0x17c   : > { %v741_v1 = vmul.f32 0.44715, %v709_v61  ;;  %v711_v2 = vmul.f32 %v679_v62, %v572_v58  ;;  %v575_v3 = vpop.f32.mrb[4].mxu0 }
 0x17d   : > { %v772_v6 = vadd.f32 %v740_v63, %v566_v50  ;;  %v742_v7 = vmul.f32 0.44715, %v710_v0  ;;  %v576_v8 = vadd.f32 %v575_v3, %v2155_v47  ;;  %v577_v9 = vpop.f32.mrb[5].mxu0 }
 0x17e   : > { %v743_v11 = vmul.f32 0.44715, %v711_v2  ;;  %v578_v12 = vadd.f32 %v577_v9, %v2157_v48  ;;  %v579_v13 = vpop.f32.mrb[6].mxu0  ;;  %v773_v15 = vadd.f32 %v741_v1, %v568_v52 }
 0x17f   : > { %v804_v16 = vmul.f32 0.7978846, %v772_v6  ;;  %v774_v17 = vadd.f32 %v742_v7, %v570_v55  ;;  %v680_v18 = vmul.f32 %v576_v8, %v576_v8  ;;  %v580_v19 = vadd.f32 %v579_v13, %v2155_v47  ;;  %v581_v20 = vpop.f32.mrb[7].mxu0 }
 0x180   : > { %v681_v21 = vmul.f32 %v578_v12, %v578_v12  ;;  %v582_v22 = vadd.f32 %v581_v20, %v2157_v48  ;;  %v775_v23 = vadd.f32 %v743_v11, %v572_v58  ;;  %v805_v24 = vmul.f32 0.7978846, %v773_v15 }
 0x181   : > { %1635 = vtanh.f32 %v804_v16  ;;  %v806_v25 = vmul.f32 0.7978846, %v774_v17  ;;  %v712_v26 = vmul.f32 %v680_v18, %v576_v8  ;;  %v682_v27 = vmul.f32 %v580_v19, %v580_v19 }
 0x182   : > { %v713_v28 = vmul.f32 %v681_v21, %v578_v12  ;;  %v683_v29 = vmul.f32 %v582_v22, %v582_v22  ;;  %v807_v30 = vmul.f32 0.7978846, %v775_v23  ;;  %1637 = vtanh.f32 %v805_v24 }
 0x183   : > { %1639 = vtanh.f32 %v806_v25  ;;  %v744_v31 = vmul.f32 0.44715, %v712_v26  ;;  %v714_v32 = vmul.f32 %v682_v27, %v580_v19  ;;  %v2175_v33 = vmul.f32 0.5, %v578_v12 }
 0x184   : > { %v745_v34 = vmul.f32 0.44715, %v713_v28  ;;  %v715_v35 = vmul.f32 %v683_v29, %v582_v22  ;;  %v585_v36 = vpop.f32.mrb[8].mxu0  ;;  %1641 = vtanh.f32 %v807_v30  ;;  %v2177_v37 = vmul.f32 0.5, %v582_v22 }
 0x185   : > { %v776_v38 = vadd.f32 %v744_v31, %v576_v8  ;;  %v746_v39 = vmul.f32 0.44715, %v714_v32  ;;  %v2180_v40 = vadd.f32 %v585_v36, %v2155_v47  ;;  %v587_v41 = vpop.f32.mrb[9].mxu0  ;;  %v2182_v42 = vmul.f32 0.5, %v576_v8 }
 0x186   : > { %v777_v43 = vadd.f32 %v745_v34, %v578_v12  ;;  %v747_v44 = vmul.f32 0.44715, %v715_v35  ;;  %v588_v45 = vadd.f32 %v587_v41, %v2157_v48  ;;  %v589_v46 = vpop.f32.mrb[10].mxu0  ;;  %v2185_v49 = vmul.f32 0.5, %v580_v19 }
 0x187   : > { %v808_v50 = vmul.f32 0.7978846, %v776_v38  ;;  %v778_v51 = vadd.f32 %v746_v39, %v580_v19  ;;  %v684_v52 = vmul.f32 %v2180_v40, %v2180_v40  ;;  %v2190_v53 = vadd.f32 %v589_v46, %v2155_v47  ;;  %v591_v54 = vpop.f32.mrb[11].mxu0 }
 0x188   : > { %v809_v55 = vmul.f32 0.7978846, %v777_v43  ;;  %v779_v56 = vadd.f32 %v747_v44, %v582_v22  ;;  %v685_v57 = vmul.f32 %v588_v45, %v588_v45  ;;  %v2193_v58 = vadd.f32 %v591_v54, %v2157_v48 }
 0x189   : > { %1643 = vtanh.f32 %v808_v50  ;;  %v810_v59 = vmul.f32 0.7978846, %v778_v51  ;;  %v716_v60 = vmul.f32 %v684_v52, %v2180_v40  ;;  %v686_v61 = vmul.f32 %v2190_v53, %v2190_v53 }
 0x18a   : > { %1645 = vtanh.f32 %v809_v55  ;;  %v811_v62 = vmul.f32 0.7978846, %v779_v56  ;;  %v717_v63 = vmul.f32 %v685_v57, %v588_v45  ;;  %v687_v0 = vmul.f32 %v2193_v58, %v2193_v58 }
 0x18b   : > { %v1636_v1 = vpop.eup %1635  ;;  %1647 = vtanh.f32 %v810_v59  ;;  %v748_v2 = vmul.f32 0.44715, %v716_v60  ;;  %v718_v3 = vmul.f32 %v686_v61, %v2190_v53  ;;  %v2201_v6 = vmul.f32 0.5, %v588_v45 }
 0x18c   : > { %v1638_v7 = vpop.eup %1637  ;;  %1649 = vtanh.f32 %v811_v62  ;;  %v749_v8 = vmul.f32 0.44715, %v717_v63  ;;  %v719_v9 = vmul.f32 %v687_v0, %v2193_v58  ;;  %v595_v11 = vpop.f32.mrb[12].mxu0  ;;  %v868_v12 = vadd.f32 1.0, %v1636_v1 }
 0x18d   : > { %v1640_v13 = vpop.eup %1639  ;;  %v780_v15 = vadd.f32 %v748_v2, %v2180_v40  ;;  %v750_v16 = vmul.f32 0.44715, %v718_v3  ;;  %v2206_v17 = vadd.f32 %v595_v11, %v2155_v47  ;;  %v597_v18 = vpop.f32.mrb[13].mxu0  ;;  %v869_v19 = vadd.f32 1.0, %v1638_v7 }
 0x18e   : > { %v1642_v20 = vpop.eup %1641  ;;  %v781_v21 = vadd.f32 %v749_v8, %v588_v45  ;;  %v751_v22 = vmul.f32 0.44715, %v719_v9  ;;  %v2209_v23 = vadd.f32 %v597_v18, %v2157_v48  ;;  %v599_v24 = vpop.f32.mrb[14].mxu0  ;;  %v870_v25 = vadd.f32 1.0, %v1640_v13 }
 0x18f   : > { %v812_v26 = vmul.f32 0.7978846, %v780_v15  ;;  %v782_v27 = vadd.f32 %v750_v16, %v2190_v53  ;;  %v688_v28 = vmul.f32 %v2206_v17, %v2206_v17  ;;  %v2215_v29 = vadd.f32 %v599_v24, %v2155_v47  ;;  %v601_v30 = vpop.f32.mrb[15].mxu0 }
 0x190   : > { %v813_v31 = vmul.f32 0.7978846, %v781_v21  ;;  %v783_v32 = vadd.f32 %v751_v22, %v2193_v58  ;;  %v689_v34 = vmul.f32 %v2209_v23, %v2209_v23  ;;  %v2221_v35 = vadd.f32 %v601_v30, %v2157_v48 }
 0x191   : > { %1651 = vtanh.f32 %v812_v26  ;;  %v814_v36 = vmul.f32 0.7978846, %v782_v27  ;;  %v720_v38 = vmul.f32 %v688_v28, %v2206_v17  ;;  %v690_v39 = vmul.f32 %v2215_v29, %v2215_v29 }
 0x192   : > { %1653 = vtanh.f32 %v813_v31  ;;  %v815_v41 = vmul.f32 0.7978846, %v783_v32  ;;  %v721_v43 = vmul.f32 %v689_v34, %v2209_v23  ;;  %v691_v44 = vmul.f32 %v2221_v35, %v2221_v35 }
 0x193   : > { %v2229_v45 = vpop.eup %1643  ;;  %1655 = vtanh.f32 %v814_v36  ;;  %v752_v46 = vmul.f32 0.44715, %v720_v38  ;;  %v722_v50 = vmul.f32 %v690_v39, %v2215_v29  ;;  %v871_v51 = vadd.f32 1.0, %v1642_v20 }
 0x194   : > { %v1646_v52 = vpop.eup %1645  ;;  %1657 = vtanh.f32 %v815_v41  ;;  %v753_v54 = vmul.f32 0.44715, %v721_v43  ;;  %v723_v55 = vmul.f32 %v691_v44, %v2221_v35  ;;  %v605_v56 = vpop.f32.mrb[16].mxu0  ;;  %v901_v57 = vmul.f32 %v869_v19, %v2163_v4 }
 0x195   : > { %v2234_v59 = vpop.eup %1647  ;;  %v784_v60 = vadd.f32 %v752_v46, %v2206_v17  ;;  %v754_v61 = vmul.f32 0.44715, %v722_v50  ;;  %v2238_v62 = vadd.f32 %v605_v56, %v2155_v47  ;;  %v607_v63 = vpop.f32.mrb[17].mxu0  ;;  %v903_v0 = vmul.f32 %v871_v51, %v2171_v14 }
 0x196   : > { %v1650_v1 = vpop.eup %1649  ;;  %v785_v2 = vadd.f32 %v753_v54, %v2209_v23  ;;  %v755_v3 = vmul.f32 0.44715, %v723_v55  ;;  %v2243_v7 = vadd.f32 %v607_v63, %v2157_v48  ;;  %v609_v8 = vpop.f32.mrb[18].mxu0  ;;  %v900_v4 = vmul.f32 %v868_v12, %v2165_v5 }
 0x197   : > { %v816_v9 = vmul.f32 0.7978846, %v784_v60  ;;  %v786_v11 = vadd.f32 %v754_v61, %v2215_v29  ;;  %v692_v13 = vmul.f32 %v2238_v62, %v2238_v62  ;;  %v949_v15 = vpack.c.bf16 %v903_v0, %v901_v57  ;;  %v611_v16 = vpop.f32.mrb[19].mxu0 }
 0x198   : > { %v817_v18 = vmul.f32 0.7978846, %v785_v2  ;;  %v787_v14 = vadd.f32 %v755_v3, %v2221_v35  ;;  %v693_v19 = vmul.f32 %v2243_v7, %v2243_v7  ;;  %v2253_v20 = vadd.f32 %v609_v8, %v2155_v47 }
 0x199   : > { %1659 = vtanh.f32 %v816_v9  ;;  %v818_v21 = vmul.f32 0.7978846, %v786_v11  ;;  %v724_v5 = vmul.f32 %v692_v13, %v2238_v62  ;;  %1124 = vmatprep.mubr.bf16.mxu1 %v949_v15  ;;  %v902_v12 = vmul.f32 %v870_v25, %v2168_v10 }
 0x19a   : > { %1661 = vtanh.f32 %v817_v18  ;;  %v819_v22 = vmul.f32 0.7978846, %v787_v14  ;;  %v725_v24 = vmul.f32 %v693_v19, %v2243_v7  ;;  %v694_v26 = vmul.f32 %v2253_v20, %v2253_v20 }
 0x19b   : > { %v2260_v27 = vpop.eup %1651  ;;  %1663 = vtanh.f32 %v818_v21  ;;  %v756_v28 = vmul.f32 0.44715, %v724_v5  ;;  %v948_v30 = vpack.c.bf16 %v902_v12, %v900_v4  ;;  %v2263_v31 = vadd.f32 %v611_v16, %v2157_v48 }
 0x19c   : > { %v2265_v32 = vpop.eup %1653  ;;  %1665 = vtanh.f32 %v819_v22  ;;  %v757_v34 = vmul.f32 0.44715, %v725_v24  ;;  %v726_v10 = vmul.f32 %v694_v26, %v2253_v20  ;;  %v615_v25 = vpop.f32.mrb[20].mxu0  ;;  %v873_v36 = vadd.f32 1.0, %v1646_v52 }
 0x19d   : > { %v2268_v38 = vpop.eup %1655  ;;  %v788_v39 = vadd.f32 %v756_v28, %v2238_v62  ;;  %1125 = vmatmul.mubr.bf16.vlgmr.msra.gmra.mrb[0].mxu1 %v948_v30  ;;  %v695_v41 = vmul.f32 %v2263_v31, %v2263_v31  ;;  %v2274_v43 = vadd.f32 %v615_v25, %v2155_v47  ;;  %v617_v44 = vpop.f32.mrb[21].mxu0  ;;  %v875_v46 = vadd.f32 1.0, %v1650_v1 }
 0x19e   : > { %v2276_v50 = vpop.eup %1657  ;;  %v789_v51 = vadd.f32 %v757_v34, %v2243_v7  ;;  %v758_v54 = vmul.f32 0.44715, %v726_v10  ;;  %v2280_v52 = vadd.f32 %v617_v44, %v2157_v48  ;;  %v905_v55 = vmul.f32 %v873_v36, %v2175_v33  ;;  %v619_v56 = vpop.f32.mrb[22].mxu0 }
 0x19f   : > { %v820_v57 = vmul.f32 0.7978846, %v788_v39  ;;  %v727_v60 = vmul.f32 %v695_v41, %v2263_v31  ;;  %v696_v61 = vmul.f32 %v2274_v43, %v2274_v43  ;;  %v907_v63 = vmul.f32 %v875_v46, %v2177_v37  ;;  %v621_v0 = vpop.f32.mrb[23].mxu0 }
 0x1a0   : > { %v821_v1 = vmul.f32 0.7978846, %v789_v51  ;;  %v790_v2 = vadd.f32 %v758_v54, %v2253_v20  ;;  %v697_v3 = vmul.f32 %v2280_v52, %v2280_v52  ;;  %v2291_v8 = vadd.f32 %v619_v56, %v2155_v47 }
 0x1a1   : > { %1667 = vtanh.f32 %v820_v57  ;;  %v759_v33 = vmul.f32 0.44715, %v727_v60  ;;  %v728_v4 = vmul.f32 %v696_v61, %v2274_v43  ;;  %v951_v9 = vpack.c.bf16 %v907_v63, %v905_v55 }
 0x1a2   : > { %1669 = vtanh.f32 %v821_v1  ;;  %v822_v11 = vmul.f32 0.7978846, %v790_v2  ;;  %v729_v13 = vmul.f32 %v697_v3, %v2280_v52  ;;  %v698_v37 = vmul.f32 %v2291_v8, %v2291_v8 }
 0x1a3   : > { %v2297_v15 = vpop.eup %1659  ;;  %v791_v16 = vadd.f32 %v759_v33, %v2263_v31  ;;  %v760_v18 = vmul.f32 0.44715, %v728_v4  ;;  %1132 = vmatprep.mubr.bf16.mxu1 %v951_v9  ;;  %v872_v14 = vadd.f32 1.0, %v2229_v45  ;;  %v874_v19 = vadd.f32 1.0, %v2234_v59 }
 0x1a4   : > { %v2302_v21 = vpop.eup %1661  ;;  %1671 = vtanh.f32 %v822_v11  ;;  %v761_v5 = vmul.f32 0.44715, %v729_v13  ;;  %v730_v12 = vmul.f32 %v698_v37, %v2291_v8  ;;  %v2306_v22 = vadd.f32 %v621_v0, %v2157_v48  ;;  %v625_v24 = vpop.f32.mrb[24].mxu0 }
 0x1a5   : > { %v2308_v26 = vpop.eup %1663  ;;  %v823_v28 = vmul.f32 0.7978846, %v791_v16  ;;  %v792_v30 = vadd.f32 %v760_v18, %v2274_v43  ;;  %v904_v34 = vmul.f32 %v872_v14, %v2182_v42  ;;  %v906_v45 = vmul.f32 %v874_v19, %v2185_v49  ;;  %v627_v59 = vpop.f32.mrb[25].mxu0 }
 0x1a6   : > { %v2313_v10 = vpop.eup %1665  ;;  %v793_v25 = vadd.f32 %v761_v5, %v2280_v52  ;;  %v762_v36 = vmul.f32 0.44715, %v730_v12  ;;  %v699_v39 = vmul.f32 %v2306_v22, %v2306_v22  ;;  %v2319_v41 = vadd.f32 %v625_v24, %v2155_v47  ;;  %v629_v44 = vpop.f32.mrb[26].mxu0 }
 0x1a7   : > { %1673 = vtanh.f32 %v823_v28  ;;  %v824_v46 = vmul.f32 0.7978846, %v792_v30  ;;  %v950_v51 = vpack.c.bf16 %v906_v45, %v904_v34  ;;  %v2322_v42 = vadd.f32 %v627_v59, %v2157_v48  ;;  %v631_v49 = vpop.f32.mrb[27].mxu0 }
 0x1a8   : > { %v825_v54 = vmul.f32 0.7978846, %v793_v25  ;;  %v794_v55 = vadd.f32 %v762_v36, %v2291_v8  ;;  %v731_v56 = vmul.f32 %v699_v39, %v2306_v22  ;;  %v700_v57 = vmul.f32 %v2319_v41, %v2319_v41 }
 0x1a9   : > { %1675 = vtanh.f32 %v824_v46  ;;  %1133 = vmatmul.mubr.bf16.gmra.mrb[4].mxu1 %v950_v51  ;;  %v701_v60 = vmul.f32 %v2322_v42, %v2322_v42  ;;  %v655_v61 = vmul.f32 0.5, %v2193_v58  ;;  %v877_v63 = vadd.f32 1.0, %v2265_v32 }
 0x1aa   : > { %1677 = vtanh.f32 %v825_v54  ;;  %v826_v0 = vmul.f32 0.7978846, %v794_v55  ;;  %v763_v1 = vmul.f32 0.44715, %v731_v56  ;;  %v732_v2 = vmul.f32 %v700_v57, %v2319_v41 }
 0x1ab   : > { %v2333_v3 = vpop.eup %1667  ;;  %v733_v33 = vmul.f32 %v701_v60, %v2322_v42  ;;  %v879_v4 = vadd.f32 1.0, %v2276_v50  ;;  %v909_v9 = vmul.f32 %v877_v63, %v2201_v6  ;;  %v2339_v11 = vadd.f32 %v629_v44, %v2155_v47 }
 0x1ac   : > { %v2341_v13 = vpop.eup %1669  ;;  %1679 = vtanh.f32 %v826_v0  ;;  %v795_v58 = vadd.f32 %v763_v1, %v2306_v22  ;;  %v764_v32 = vmul.f32 0.44715, %v732_v2  ;;  %v652_v37 = vmul.f32 0.5, %v2180_v40  ;;  %v635_v16 = vpop.f32.mrb[28].mxu0 }
 0x1ad   : > { %v765_v18 = vmul.f32 0.44715, %v733_v33  ;;  %v911_v14 = vmul.f32 %v879_v4, %v655_v61  ;;  %v702_v19 = vmul.f32 %v2339_v11, %v2339_v11  ;;  %v654_v50 = vmul.f32 0.5, %v2190_v53  ;;  %v637_v6 = vpop.f32.mrb[29].mxu0 }
 0x1ae   : > { %v2348_v5 = vpop.eup %1671  ;;  %v827_v12 = vmul.f32 0.7978846, %v795_v58  ;;  %v796_v24 = vadd.f32 %v764_v32, %v2319_v41  ;;  %v876_v28 = vadd.f32 1.0, %v2260_v27  ;;  %v878_v30 = vadd.f32 1.0, %v2268_v38  ;;  %v639_v34 = vpop.f32.mrb[30].mxu0 }
 0x1af   : > { %v797_v40 = vadd.f32 %v765_v18, %v2322_v42  ;;  %v953_v45 = vpack.c.bf16 %v911_v14, %v909_v9  ;;  %v734_v59 = vmul.f32 %v702_v19, %v2339_v11  ;;  %v2356_v25 = vadd.f32 %v631_v49, %v2157_v48  ;;  %v641_v53 = vpop.f32.mrb[31].mxu0 }
 0x1b0   : > { %1681 = vtanh.f32 %v827_v12  ;;  %v828_v36 = vmul.f32 0.7978846, %v796_v24  ;;  %v908_v39 = vmul.f32 %v876_v28, %v652_v37  ;;  %v910_v44 = vmul.f32 %v878_v30, %v654_v50 }
 0x1b1   : > { %v1674_v46 = vpop.eup %1673  ;;  %v829_v51 = vmul.f32 0.7978846, %v797_v40  ;;  %1140 = vmatprep.mubr.bf16.mxu1 %v953_v45  ;;  %v766_v27 = vmul.f32 0.44715, %v734_v59  ;;  %v703_v38 = vmul.f32 %v2356_v25, %v2356_v25  ;;  %v2361_v54 = vadd.f32 %v635_v16, %v2155_v47 }
 0x1b2   : > { %1683 = vtanh.f32 %v828_v36  ;;  %v952_v55 = vpack.c.bf16 %v910_v44, %v908_v39  ;;  %v2364_v49 = vadd.f32 %v637_v6, %v2157_v48  ;;  %v657_v56 = vmul.f32 0.5, %v2209_v23 }
 0x1b3   : > { %v2367_v57 = vpop.eup %1675  ;;  %1685 = vtanh.f32 %v829_v51  ;;  %v798_v60 = vadd.f32 %v766_v27, %v2339_v11  ;;  %v735_v61 = vmul.f32 %v703_v38, %v2356_v25  ;;  %v704_v63 = vmul.f32 %v2361_v54, %v2361_v54 }
 0x1b4   : > { %v1678_v0 = vpop.eup %1677  ;;  %1141 = vmatmul.mubr.bf16.gmra.mrb[8].mxu1 %v952_v55  ;;  %v705_v1 = vmul.f32 %v2364_v49, %v2364_v49  ;;  %v659_v2 = vmul.f32 0.5, %v2221_v35  ;;  %v881_v33 = vadd.f32 1.0, %v2302_v21  ;;  %v883_v23 = vadd.f32 1.0, %v2313_v10 }
 0x1b5   : > { %v830_v4 = vmul.f32 0.7978846, %v798_v60  ;;  %v767_v9 = vmul.f32 0.44715, %v735_v61  ;;  %v736_v58 = vmul.f32 %v704_v63, %v2361_v54  ;;  %v2380_v32 = vadd.f32 %v639_v34, %v2155_v47 }
 0x1b6   : > { %v1680_v37 = vpop.eup %1679  ;;  %v737_v16 = vmul.f32 %v705_v1, %v2364_v49  ;;  %v913_v18 = vmul.f32 %v881_v33, %v657_v56  ;;  %v915_v14 = vmul.f32 %v883_v23, %v659_v2  ;;  %v656_v19 = vmul.f32 0.5, %v2206_v17 }
 0x1b7   : > { %1687 = vtanh.f32 %v830_v4  ;;  %v799_v35 = vadd.f32 %v767_v9, %v2356_v25  ;;  %v768_v21 = vmul.f32 0.44715, %v736_v58  ;;  %v706_v10 = vmul.f32 %v2380_v32, %v2380_v32 }
 0x1b8   : > { %v769_v50 = vmul.f32 0.44715, %v737_v16  ;;  %v955_v6 = vpack.c.bf16 %v915_v14, %v913_v18  ;;  %v658_v12 = vmul.f32 0.5, %v2215_v29  ;;  %v880_v47 = vadd.f32 1.0, %v2297_v15 }
 0x1b9   : > { %v831_v24 = vmul.f32 0.7978846, %v799_v35  ;;  %v800_v28 = vadd.f32 %v768_v21, %v2361_v54  ;;  %v738_v30 = vmul.f32 %v706_v10, %v2380_v32  ;;  %v882_v17 = vadd.f32 1.0, %v2308_v26 }
 0x1ba   : > { %v1682_v34 = vpop.eup %1681  ;;  %v801_v40 = vadd.f32 %v769_v50, %v2364_v49  ;;  %1148 = vmatprep.mubr.bf16.mxu1 %v955_v6  ;;  %v912_v45 = vmul.f32 %v880_v47, %v656_v19  ;;  %v2394_v59 = vadd.f32 %v641_v53, %v2157_v48  ;;  %v661_v36 = vmul.f32 0.5, %v2243_v7 }
 0x1bb   : > { %1689 = vtanh.f32 %v831_v24  ;;  %v832_v29 = vmul.f32 0.7978846, %v800_v28  ;;  %v770_v15 = vmul.f32 0.44715, %v738_v30  ;;  %v914_v39 = vmul.f32 %v882_v17, %v658_v12 }
 0x1bc   : > { %v1684_v44 = vpop.eup %1683  ;;  %v833_v51 = vmul.f32 0.7978846, %v801_v40  ;;  %v707_v27 = vmul.f32 %v2394_v59, %v2394_v59  ;;  %v663_v26 = vmul.f32 0.5, %v2263_v31  ;;  %v885_v38 = vadd.f32 1.0, %v2341_v13 }
 0x1bd   : > { %v1686_v55 = vpop.eup %1685  ;;  %1691 = vtanh.f32 %v832_v29  ;;  %v802_v48 = vadd.f32 %v770_v15, %v2380_v32  ;;  %v954_v53 = vpack.c.bf16 %v914_v39, %v912_v45  ;;  %v887_v56 = vadd.f32 1.0, %v1674_v46 }
 0x1be   : > { %1693 = vtanh.f32 %v833_v51  ;;  %v739_v7 = vmul.f32 %v707_v27, %v2394_v59  ;;  %v917_v60 = vmul.f32 %v885_v38, %v661_v36  ;;  %v660_v1 = vmul.f32 0.5, %v2238_v62 }
 0x1bf   : > { %v834_v61 = vmul.f32 0.7978846, %v802_v48  ;;  %1149 = vmatmul.mubr.bf16.gmra.mrb[12].mxu1 %v954_v53  ;;  %v919_v63 = vmul.f32 %v887_v56, %v663_v26  ;;  %v884_v2 = vadd.f32 1.0, %v2333_v3  ;;  %v662_v13 = vmul.f32 0.5, %v2253_v20 }
 0x1c0   : > { %v771_v31 = vmul.f32 0.44715, %v739_v7  ;;  %v886_v33 = vadd.f32 1.0, %v2348_v5  ;;  %v665_v23 = vmul.f32 0.5, %v2280_v52  ;;  %v667_v9 = vmul.f32 0.5, %v2306_v22 }
 0x1c1   : > { %v1688_v4 = vpop.eup %1687  ;;  %1695 = vtanh.f32 %v834_v61  ;;  %v957_v46 = vpack.c.bf16 %v919_v63, %v917_v60  ;;  %v889_v58 = vadd.f32 1.0, %v1678_v0  ;;  %v916_v18 = vmul.f32 %v884_v2, %v660_v1 }
 0x1c2   : > { %v803_v16 = vadd.f32 %v771_v31, %v2394_v59  ;;  %v918_v14 = vmul.f32 %v886_v33, %v662_v13  ;;  %v891_v62 = vadd.f32 1.0, %v1682_v34  ;;  %v664_v3 = vmul.f32 0.5, %v2274_v43  ;;  %v933_v31 = vld [vmem:[#allocation2 + $0x8] sm:$0xff] }
 0x1c3   : > { %1156 = vmatprep.mubr.bf16.mxu1 %v957_v46  ;;  %v666_v20 = vmul.f32 0.5, %v2291_v8  ;;  %v888_v5 = vadd.f32 1.0, %v2367_v57  ;;  %v890_v19 = vadd.f32 1.0, %v1680_v37  ;;  %v921_v21 = vmul.f32 %v889_v58, %v665_v23 }
 0x1c4   : > { %v835_v52 = vmul.f32 0.7978846, %v803_v16  ;;  %v956_v35 = vpack.c.bf16 %v918_v14, %v916_v18  ;;  %v923_v10 = vmul.f32 %v891_v62, %v667_v9  ;;  %v669_v6 = vmul.f32 0.5, %v2322_v42  ;;  %v935_v16 = vld [vmem:[#allocation2 + $0x18] sm:$0xff] }
 0x1c5   : > { %v1690_v50 = vpop.eup %1689  ;;  %v920_v22 = vmul.f32 %v888_v5, %v664_v3  ;;  %v922_v0 = vmul.f32 %v890_v19, %v666_v20  ;;  %v893_v12 = vadd.f32 1.0, %v1686_v55  ;;  %v671_v24 = vmul.f32 0.5, %v2356_v25  ;;  %v936_v5 = vld [vmem:[#allocation2 + $0x20] sm:$0xff] }
 0x1c6   : > { %1697 = vtanh.f32 %v835_v52  ;;  %v959_v47 = vpack.c.bf16 %v923_v10, %v921_v21  ;;  %v895_v43 = vadd.f32 1.0, %v1690_v50  ;;  %v668_v57 = vmul.f32 0.5, %v2319_v41  ;;  %v937_v21 = vld [vmem:[#allocation2 + $0x28] sm:$0xff] }
 0x1c7   : > { %v1692_v28 = vpop.eup %1691  ;;  %1157 = vmatmul.mubr.bf16.gmra.mrb[16].mxu1 %v956_v35  ;;  %v958_v8 = vpack.c.bf16 %v922_v0, %v920_v22  ;;  %v892_v37 = vadd.f32 1.0, %v1684_v44  ;;  %v925_v17 = vmul.f32 %v893_v12, %v669_v6  ;;  %v670_v40 = vmul.f32 0.5, %v2339_v11  ;;  %v938_v12 = vld [vmem:[#allocation2 + $0x30] sm:$0xff] }
 0x1c8   : > { %v1694_v30 = vpop.eup %1693  ;;  %1164 = vmatprep.mubr.bf16.mxu1 %v959_v47  ;;  %v927_v34 = vmul.f32 %v895_v43, %v671_v24  ;;  %v894_v45 = vadd.f32 1.0, %v1688_v4  ;;  %v896_v15 = vadd.f32 1.0, %v1692_v28  ;;  %v672_v51 = vmul.f32 0.5, %v2361_v54  ;;  %v934_v4 = vld [vmem:[#allocation2 + $0x10] sm:$0xff]  ;;  %v939_v28 = vld [vmem:[#allocation2 + $0x38] sm:$0xff] }
 0x1c9   : > { %v924_v36 = vmul.f32 %v892_v37, %v668_v57  ;;  %v674_v27 = vmul.f32 0.5, %v2380_v32  ;;  %v897_v38 = vadd.f32 1.0, %v1694_v30  ;;  %v673_v11 = vmul.f32 0.5, %v2364_v49  ;;  %v932_v32 = vld [vmem:[#allocation2] sm:$0xff] }
 0x1ca   : > { %v961_v42 = vpack.c.bf16 %v927_v34, %v925_v17  ;;  %v926_v29 = vmul.f32 %v894_v45, %v670_v40  ;;  %v928_v41 = vmul.f32 %v896_v15, %v672_v51  ;;  %v675_v53 = vmul.f32 0.5, %v2394_v59  ;;  %v940_v34 = vld [vmem:[#allocation2 + $0x40] sm:$0xff] }
 0x1cb   : > { %v1696_v39 = vpop.eup %1695  ;;  %v929_v7 = vmul.f32 %v897_v38, %v673_v11  ;;  %v943_v38 = vld [vmem:[#allocation2 + $0x58] sm:$0xff] }
 0x1cc   : > { %v960_v25 = vpack.c.bf16 %v926_v29, %v924_v36  ;;  %v898_v26 = vadd.f32 1.0, %v1696_v39  ;;  %v941_v36 = vld [vmem:[#allocation2 + $0x48] sm:$0xff] }
 0x1ce   : > { %v930_v44 = vmul.f32 %v898_v26, %v674_v27  ;;  %v942_v27 = vld [vmem:[#allocation2 + $0x50] sm:$0xff] }
 0x1cf   : > { %1165 = vmatmul.mubr.bf16.gmra.mrb[20].mxu1 %v958_v8 }
 0x1d0   : > { %v1698_v55 = vpop.eup %1697  ;;  %1172 = vmatprep.mubr.bf16.mxu1 %v961_v42  ;;  %v962_v48 = vpack.c.bf16 %v930_v44, %v928_v41 }
 0x1d1   : > { %v899_v56 = vadd.f32 1.0, %v1698_v55 }
 0x1d3   : > { %v931_v60 = vmul.f32 %v899_v56, %v675_v53 }
 0x1d5   : > { %v963_v61 = vpack.c.bf16 %v931_v60, %v929_v7  ;;  %v944_v7 = vld [vmem:[#allocation2 + $0x60] sm:$0xff] }
 0x1d7   : > { %1173 = vmatmul.mubr.bf16.gmra.mrb[24].mxu1 %v960_v25 }
 0x1d8   : > { %1180 = vmatprep.mubr.bf16.mxu1 %v963_v61 }
 0x1df   : > { %1181 = vmatmul.mubr.bf16.gmra.mrb[28].mxu1 %v962_v48 }
 0x270   : > { %v1453_v54 = vpop.f32.mrb[0].mxu1 }
 0x271   : > { %v1454_v63 = vpop.f32.mrb[1].mxu1 }
 0x272   : > { %v1455_v1 = vadd.f32 %v1454_v63, %v1453_v54  ;;  %v1456_v2 = vpop.f32.mrb[2].mxu1 }
 0x273   : > { %v1457_v13 = vpop.f32.mrb[3].mxu1 }
 0x274   : > { %v1189_v33 = vadd.f32 %v1455_v1, %v932_v32  ;;  %v1458_v23 = vadd.f32 %v1457_v13, %v1456_v2  ;;  %v945_v32 = vld [vmem:[#allocation2 + $0x68] sm:$0xff] }
 0x276   : > { %1205 = vst [vmem:[#allocation2] sm:$0xff] %v1189_v33  ;;  %v1190_v49 = vadd.f32 %v1458_v23, %v933_v31  ;;  %v946_v33 = vld [vmem:[#allocation2 + $0x70] sm:$0xff] }
 0x278   : > { %1206 = vst [vmem:[#allocation2 + $0x8] sm:$0xff] %v1190_v49 }
 0x27c   : > { %v1459_v59 = vpop.f32.mrb[4].mxu1 }
 0x27d   : > { %v1460_v46 = vpop.f32.mrb[5].mxu1 }
 0x27e   : > { %v1461_v9 = vadd.f32 %v1460_v46, %v1459_v59  ;;  %v1462_v58 = vpop.f32.mrb[6].mxu1 }
 0x27f   : > { %v1463_v18 = vpop.f32.mrb[7].mxu1 }
 0x280   : > { %v1191_v14 = vadd.f32 %v1461_v9, %v934_v4  ;;  %v1464_v62 = vadd.f32 %v1463_v18, %v1462_v58  ;;  %v947_v4 = vld [vmem:[#allocation2 + $0x78] sm:$0xff]  ;;  %v1225_v18 = vld [vmem:[#allocation2] sm:$0xff] (!%p1430_p5) }
 0x281   : > { %1241 = vst [vmem:[#allocation9] sm:$0xff] (!%p1430_p5), %v1225_v18 }
 0x282   : > { %1207 = vst [vmem:[#allocation2 + $0x10] sm:$0xff] %v1191_v14  ;;  %v1192_v3 = vadd.f32 %v1464_v62, %v935_v16  ;;  %v1226_v14 = vld [vmem:[#allocation2 + $0x8] sm:$0xff] (!%p1430_p5) }
 0x283   : > { %1242 = vst [vmem:[#allocation9 + $0x8] sm:$0xff] (!%p1430_p5), %v1226_v14 }
 0x284   : > { %1208 = vst [vmem:[#allocation2 + $0x18] sm:$0xff] %v1192_v3 }
 0x287   : > { %v1465_v20 = vpop.f32.mrb[8].mxu1 }
 0x288   : > { %v1466_v19 = vpop.f32.mrb[9].mxu1 }
 0x289   : > { %v1467_v52 = vadd.f32 %v1466_v19, %v1465_v20  ;;  %v1468_v35 = vpop.f32.mrb[10].mxu1  ;;  %v1227_v62 = vld [vmem:[#allocation2 + $0x10] sm:$0xff] (!%p1430_p5) }
 0x28a   : > { %v1469_v10 = vpop.f32.mrb[11].mxu1  ;;  %1243 = vst [vmem:[#allocation9 + $0x10] sm:$0xff] (!%p1430_p5), %v1227_v62 }
 0x28b   : > { %v1193_v50 = vadd.f32 %v1467_v52, %v936_v5  ;;  %v1470_v22 = vadd.f32 %v1469_v10, %v1468_v35  ;;  %v1228_v3 = vld [vmem:[#allocation2 + $0x18] sm:$0xff] (!%p1430_p5) }
 0x28c   : > { %1244 = vst [vmem:[#allocation9 + $0x18] sm:$0xff] (!%p1430_p5), %v1228_v3 }
 0x28d   : > { %1209 = vst [vmem:[#allocation2 + $0x20] sm:$0xff] %v1193_v50  ;;  %v1194_v0 = vadd.f32 %v1470_v22, %v937_v21 }
 0x28f   : > { %1210 = vst [vmem:[#allocation2 + $0x28] sm:$0xff] %v1194_v0 }
 0x292   : > { %v1471_v6 = vpop.f32.mrb[12].mxu1 }
 0x293   : > { %v1472_v47 = vpop.f32.mrb[13].mxu1 }
 0x294   : > { %v1473_v24 = vadd.f32 %v1472_v47, %v1471_v6  ;;  %v1474_v43 = vpop.f32.mrb[14].mxu1  ;;  %v1229_v20 = vld [vmem:[#allocation2 + $0x20] sm:$0xff] (!%p1430_p5) }
 0x295   : > { %v1475_v8 = vpop.f32.mrb[15].mxu1  ;;  %1245 = vst [vmem:[#allocation9 + $0x20] sm:$0xff] (!%p1430_p5), %v1229_v20 }
 0x296   : > { %v1195_v57 = vadd.f32 %v1473_v24, %v938_v12  ;;  %v1476_v37 = vadd.f32 %v1475_v8, %v1474_v43  ;;  %v1230_v5 = vld [vmem:[#allocation2 + $0x28] sm:$0xff] (!%p1430_p5) }
 0x297   : > { %1246 = vst [vmem:[#allocation9 + $0x28] sm:$0xff] (!%p1430_p5), %v1230_v5 }
 0x298   : > { %1211 = vst [vmem:[#allocation2 + $0x30] sm:$0xff] %v1195_v57  ;;  %v1196_v30 = vadd.f32 %v1476_v37, %v939_v28 }
 0x29a   : > { %1212 = vst [vmem:[#allocation2 + $0x38] sm:$0xff] %v1196_v30  ;;  %v1477_v17 = vpop.f32.mrb[16].mxu1 }
 0x29b   : > { %v1478_v40 = vpop.f32.mrb[17].mxu1 }
 0x29c   : > { %v1479_v45 = vadd.f32 %v1478_v40, %v1477_v17  ;;  %v1480_v42 = vpop.f32.mrb[18].mxu1 }
 0x29d   : > { %v1481_v29 = vpop.f32.mrb[19].mxu1 }
 0x29e   : > { %v1197_v15 = vadd.f32 %v1479_v45, %v940_v34  ;;  %v1482_v39 = vadd.f32 %v1481_v29, %v1480_v42 }
 0x29f   : > { %v1231_v19 = vld [vmem:[#allocation2 + $0x30] sm:$0xff] (!%p1430_p5) }
 0x2a0   : > { %1213 = vst [vmem:[#allocation2 + $0x40] sm:$0xff] %v1197_v15  ;;  %v1198_v25 = vadd.f32 %v1482_v39, %v941_v36  ;;  %1247 = vst [vmem:[#allocation9 + $0x30] sm:$0xff] (!%p1430_p5), %v1231_v19 }
 0x2a1   : > { %v1232_v52 = vld [vmem:[#allocation2 + $0x38] sm:$0xff] (!%p1430_p5) }
 0x2a2   : > { %1214 = vst [vmem:[#allocation2 + $0x48] sm:$0xff] %v1198_v25  ;;  %v1483_v51 = vpop.f32.mrb[20].mxu1  ;;  %1248 = vst [vmem:[#allocation9 + $0x38] sm:$0xff] (!%p1430_p5), %v1232_v52 }
 0x2a3   : > { %v1484_v26 = vpop.f32.mrb[21].mxu1 }
 0x2a4   : > { %v1485_v41 = vadd.f32 %v1484_v26, %v1483_v51  ;;  %v1486_v44 = vpop.f32.mrb[22].mxu1 }
 0x2a5   : > { %v1487_v55 = vpop.f32.mrb[23].mxu1 }
 0x2a6   : > { %v1199_v48 = vadd.f32 %v1485_v41, %v942_v27  ;;  %v1488_v11 = vadd.f32 %v1487_v55, %v1486_v44 }
 0x2a7   : > { %v1233_v35 = vld [vmem:[#allocation2 + $0x40] sm:$0xff] (!%p1430_p5) }
 0x2a8   : > { %1215 = vst [vmem:[#allocation2 + $0x50] sm:$0xff] %v1199_v48  ;;  %v1200_v53 = vadd.f32 %v1488_v11, %v943_v38  ;;  %1249 = vst [vmem:[#allocation9 + $0x40] sm:$0xff] (!%p1430_p5), %v1233_v35 }
 0x2a9   : > { %v1234_v21 = vld [vmem:[#allocation2 + $0x48] sm:$0xff] (!%p1430_p5) }
 0x2aa   : > { %1216 = vst [vmem:[#allocation2 + $0x58] sm:$0xff] %v1200_v53  ;;  %v1489_v56 = vpop.f32.mrb[24].mxu1  ;;  %1250 = vst [vmem:[#allocation9 + $0x48] sm:$0xff] (!%p1430_p5), %v1234_v21 }
 0x2ab   : > { %v1490_v60 = vpop.f32.mrb[25].mxu1 }
 0x2ac   : > { %v1491_v61 = vadd.f32 %v1490_v60, %v1489_v56  ;;  %v1492_v54 = vpop.f32.mrb[26].mxu1 }
 0x2ad   : > { %v1493_v63 = vpop.f32.mrb[27].mxu1 }
 0x2ae   : > { %v1201_v1 = vadd.f32 %v1491_v61, %v944_v7  ;;  %v1494_v2 = vadd.f32 %v1493_v63, %v1492_v54 }
 0x2af   : > { %v1235_v10 = vld [vmem:[#allocation2 + $0x50] sm:$0xff] (!%p1430_p5) }
 0x2b0   : > { %1217 = vst [vmem:[#allocation2 + $0x60] sm:$0xff] %v1201_v1  ;;  %v1202_v31 = vadd.f32 %v1494_v2, %v945_v32  ;;  %1251 = vst [vmem:[#allocation9 + $0x50] sm:$0xff] (!%p1430_p5), %v1235_v10 }
 0x2b1   : > { %v1236_v50 = vld [vmem:[#allocation2 + $0x58] sm:$0xff] (!%p1430_p5) }
 0x2b2   : > { %1218 = vst [vmem:[#allocation2 + $0x68] sm:$0xff] %v1202_v31  ;;  %v1495_v13 = vpop.f32.mrb[28].mxu1  ;;  %1252 = vst [vmem:[#allocation9 + $0x58] sm:$0xff] (!%p1430_p5), %v1236_v50 }
 0x2b3   : > { %v1496_v23 = vpop.f32.mrb[29].mxu1 }
 0x2b4   : > { %v1497_v49 = vadd.f32 %v1496_v23, %v1495_v13  ;;  %v1498_v59 = vpop.f32.mrb[30].mxu1  ;;  %1224 = sbr.rel (%p1430_p5) target bundleno = 707 (0x2c3), region = 60 }
 0x2b5   : > { %v1499_v46 = vpop.f32.mrb[31].mxu1 }
 0x2b6   : > { %v1203_v9 = vadd.f32 %v1497_v49, %v946_v33  ;;  %v1500_v58 = vadd.f32 %v1499_v46, %v1498_v59 }
 0x2b7   : > { %v1237_v22 = vld [vmem:[#allocation2 + $0x60] sm:$0xff] (!%p1430_p5) }
 0x2b8   : > { %1219 = vst [vmem:[#allocation2 + $0x70] sm:$0xff] %v1203_v9  ;;  %v1204_v16 = vadd.f32 %v1500_v58, %v947_v4  ;;  %1253 = vst [vmem:[#allocation9 + $0x60] sm:$0xff] (!%p1430_p5), %v1237_v22 }
 0x2b9   : > { %v1238_v0 = vld [vmem:[#allocation2 + $0x68] sm:$0xff] (!%p1430_p5) }
 0x2ba   : > { %1220 = vst [vmem:[#allocation2 + $0x78] sm:$0xff] %v1204_v16  ;;  %1254 = vst [vmem:[#allocation9 + $0x68] sm:$0xff] (!%p1430_p5), %v1238_v0 }
 0x2bf   : > { %v1239_v6 = vld [vmem:[#allocation2 + $0x70] sm:$0xff] }
 0x2c0   : > { %1255 = vst [vmem:[#allocation9 + $0x70] sm:$0xff] %v1239_v6 }
 0x2c1   : > { %v1240_v12 = vld [vmem:[#allocation2 + $0x78] sm:$0xff] }
 0x2c2   : > { %1256 = vst [vmem:[#allocation9 + $0x78] sm:$0xff] %v1240_v12 }
 0x2c3 PF: > { %p1527_p1 = scmp.eq.s32.totalorder %s2004_s15, 1  ;;  %s1882_s21 = smov [#allocation9]  }
 0x2c4   : > { %s1266_s12 = sshll.u32 %s1882_s21, 4  ;;  %s1267_s12 = int_to_ptr.vmem [resolvable:$true] %s1266_s12 }
 0x2c5   : > { %s1787_s25 = scalar_lea.vmem %s1267_s12, 2048  ;;  %p1794_p2 = scmp.lt.s32.totalorder %s1267_s12, %s1267_s12 }
 0x2c6   : > { %p1788_p4 = scmp.ne.s32.totalorder %s1267_s12, %s1787_s25  ;;  %p1795_p7 = scmp.lt.s32.totalorder %s1787_s25, %s1787_s25 }
 0x2c8   : > { %p1789_p8 = pnand %p1788_p4, %p1527_p1  ;;  %p1796_p9 = por %p1795_p7, %p1794_p2 }
 0x2ca   : > { %p1790_p13 = pneg %p1789_p8 }
 0x2cc   : > { %p1797_p3 = pnand %p1796_p9, %p1790_p13 }
 0x2ce   : > { %1800 = shalt.err (!%p1797_p3)
}
 0x2cf   : > { %s1801_s10 = scalar_lea.hbm %s2468_s5, 2048 }
 0x2d0   : > { %p1802_p11 = scmp.ne.s32.totalorder %s2468_s5, %s1801_s10  ;;  %p1807_p6 = scmp.lt.u32.totalorder %s1801_s10, %s2468_s5 }
 0x2d2   : > { %p1803_p12 = pnand %p1802_p11, %p1527_p1 }
 0x2d4   : > { %p1804_p10 = pneg %p1803_p12 }
 0x2d6   : > { %p1809_p0 = pnand %p1807_p6, %p1804_p10 }
 0x2d8   : > { %1812 = shalt.err (!%p1809_p0)
}
 0x2d9   : > { %s1883_s13 = smov 128   ;;  %s1884_s17 = smov 8  }
 0x2da   : > { %1510 = dma.vmem_to_hbm [thread:$0]  (%p1527_p1), %s1267_s12, 2048, %s2468_s5, [#allocation5], %s1883_s13, %s1883_s13, %s1884_s17  }
 0x2db   : > { %1846 = dma.done.wait (%p1527_p1), [#allocation5], 2048  }
 0x2dc   : > { %1848 = vsyncadd (%p1527_p1), [#allocation5], 4294965248 }
 0x2dd PF: > { %s20_s23 = sadd.s32 1, %s1871_s23   ;;  %s2488_s18 = smov %s1855_s19 }
 0x2de   : > { %p17_p5 = scmp.ge.s32.totalorder %s20_s23, 4   ;;  %s2489_s19 = smov %s1859_s20 }
 0x2df   : > { %s2490_s20 = smov %s1959_s30  ;;  %s2491_s21 = smov %s1867_s22 }
 0x2e0   : > { %s2492_s22 = smov %s2494_s24  ;;  %19 = sbr.rel (!%p17_p5) target bundleno = 8 (0x8), region = 106 }
 0x2e7   :  { %1282 = vsyncpa [#allocation4], 1 }
 0x2e8   :  { %1284 = vsyncpa [#allocation4 + $0x1], 1 }
 0x2e9   :  { %1285 = vsyncpa [#allocation7], 1 }
 0x2ea   :  { %1287 = vsyncpa [#allocation7 + $0x1], 1 }
 0x2eb   :  { %1288 = vsyncpa [#allocation5], 1 }
 0x2ec   :  { %1290 = vsyncpa [#allocation5 + $0x1], 1 }

</bundles_post_ra>
